<compile_context>
chip_gen: v7x
topology: tpu7x:2x2x1
jax: 0.10.0
libtpu: 0.0.40
codegen_flags: <defaults>
</compile_context>

<pallas_src>
import jax
import jax.numpy as jnp
from jax.experimental import pallas as pl
from jax.experimental.pallas import tpu as pltpu


def _gelu_exact(h):
    # Exact erf-based GELU (matches nn.GELU() default). Computed in f32.
    return 0.5 * h * (1.0 + jax.lax.erf(h * 0.7071067811865476))


def _fc_kernel(x_ref, w1_ref, b1_ref, w2_ref, b2_ref, w3_ref, b3_ref, o_ref):
    # One row tile: (row_tile, Cin) x resident weights. All matmuls accumulate in f32
    # on the MXU; operands stay in their native (possibly bf16) dtype.
    cdt = w1_ref.dtype  # MXU operand dtype (no forced upcast)

    h = jnp.dot(x_ref[...], w1_ref[...], preferred_element_type=jnp.float32)
    h = _gelu_exact(h + b1_ref[...].astype(jnp.float32))
    # Dropout(p=0.0) == identity.

    h = jnp.dot(h.astype(cdt), w2_ref[...], preferred_element_type=jnp.float32)
    h = _gelu_exact(h + b2_ref[...].astype(jnp.float32))
    # Dropout(p=0.0) == identity.

    o = jnp.dot(h.astype(cdt), w3_ref[...], preferred_element_type=jnp.float32)
    o = o + b3_ref[...].astype(jnp.float32)
    o_ref[...] = o.astype(o_ref.dtype)


def _round_up(v, m):
    return ((v + m - 1) // m) * m


def _pad2(a, target_shape):
    pads = [(0, t - s) for s, t in zip(a.shape, target_shape)]
    if any(p[1] for p in pads):
        return jnp.pad(a, pads)
    return a


def _choose_row_tile(n):
    # Biggest tile that still gives >= 2 grid steps (pipelining + megacore sharding);
    # falls back to 128 (minimum MXU-friendly tile) for small N.
    for t in (512, 256, 128):
        if n >= 2 * t:
            return t
    return 128


def fc_pallas(x, w1, b1, w2, b2, w3, b3, *, row_tile=None):
    """x: (N, Cin); w1: (Cin, H); w2: (H, H); w3: (H, Cout); biases 1-D or (1, dim).

    Returns (N, Cout). Lane dims padded to 128 and rows to row_tile internally
    (padding is exact); result is sliced back to (N, Cout).
    """
    N, Cin = x.shape
    H1 = w1.shape[1]
    H2 = w2.shape[1]
    Cout = w3.shape[1]

    if row_tile is None:
        row_tile = _choose_row_tile(N)

    # Lane-dense padding (last dims -> multiples of 128), rows -> multiple of row_tile.
    Cin_p, H1_p, H2_p, Cout_p = (_round_up(d, 128) for d in (Cin, H1, H2, Cout))
    N_p = _round_up(N, row_tile)

    x_p = _pad2(x, (N_p, Cin_p))
    w1_p = _pad2(w1, (Cin_p, H1_p))
    b1_p = _pad2(jnp.reshape(b1, (1, -1)), (1, H1_p))
    w2_p = _pad2(w2, (H1_p, H2_p))
    b2_p = _pad2(jnp.reshape(b2, (1, -1)), (1, H2_p))
    w3_p = _pad2(w3, (H2_p, Cout_p))
    b3_p = _pad2(jnp.reshape(b3, (1, -1)), (1, Cout_p))

    grid = (N_p // row_tile,)

    out_p = pl.pallas_call(
        _fc_kernel,
        out_shape=jax.ShapeDtypeStruct((N_p, Cout_p), x.dtype),
        grid_spec=pltpu.PrefetchScalarGridSpec(
            num_scalar_prefetch=0,
            grid=grid,
            in_specs=[
                pl.BlockSpec((row_tile, Cin_p), lambda i: (i, 0)),  # x row tile (streams)
                pl.BlockSpec((Cin_p, H1_p), lambda i: (0, 0)),      # W1 (resident)
                pl.BlockSpec((1, H1_p), lambda i: (0, 0)),          # b1
                pl.BlockSpec((H1_p, H2_p), lambda i: (0, 0)),       # W2 (resident)
                pl.BlockSpec((1, H2_p), lambda i: (0, 0)),          # b2
                pl.BlockSpec((H2_p, Cout_p), lambda i: (0, 0)),     # W3 (resident)
                pl.BlockSpec((1, Cout_p), lambda i: (0, 0)),        # b3
            ],
            out_specs=pl.BlockSpec((row_tile, Cout_p), lambda i: (i, 0)),  # lane-dense stores
        ),
        compiler_params=pltpu.CompilerParams(
            dimension_semantics=("parallel",),      # shard row tiles across TCs (v7x)
            vmem_limit_bytes=48 * 1024 * 1024,      # above default scoped limit, < v7x 64 MiB
        ),
    )(x_p, w1_p, b1_p, w2_p, b2_p, w3_p, b3_p)

    return out_p[:N, :Cout]


def fc_reference(x, w1, b1, w2, b2, w3, b3):
    def gelu(h):
        return 0.5 * h * (1.0 + jax.lax.erf(h / jnp.sqrt(2.0)))

    b1 = jnp.reshape(b1, (1, -1))
    b2 = jnp.reshape(b2, (1, -1))
    b3 = jnp.reshape(b3, (1, -1))
    h = gelu(x @ w1 + b1)
    h = gelu(h @ w2 + b2)
    o = h @ w3 + b3
    return o.astype(x.dtype)


if __name__ == "__main__":
    # Small shapes consistent with the module defaults: in=16, hidden=32, out=3; N=200 points.
    N, Cin, H, Cout = 200, 16, 32, 3
    key = jax.random.PRNGKey(0)
    kx, kw1, kb1, kw2, kb2, kw3, kb3 = jax.random.split(key, 7)

    x = jax.random.normal(kx, (N, Cin), dtype=jnp.float32)

    # nn.Linear-style init U(-1/sqrt(fan_in), 1/sqrt(fan_in)); weights stored as (in, out).
    lim1 = 1.0 / (Cin ** 0.5)
    lim2 = 1.0 / (H ** 0.5)
    w1 = jax.random.uniform(kw1, (Cin, H), minval=-lim1, maxval=lim1, dtype=jnp.float32)
    b1 = jax.random.uniform(kb1, (H,), minval=-lim1, maxval=lim1, dtype=jnp.float32)
    w2 = jax.random.uniform(kw2, (H, H), minval=-lim2, maxval=lim2, dtype=jnp.float32)
    b2 = jax.random.uniform(kb2, (H,), minval=-lim2, maxval=lim2, dtype=jnp.float32)
    w3 = jax.random.uniform(kw3, (H, Cout), minval=-lim2, maxval=lim2, dtype=jnp.float32)
    b3 = jax.random.uniform(kb3, (Cout,), minval=-lim2, maxval=lim2, dtype=jnp.float32)

    out = fc_pallas(x, w1, b1, w2, b2, w3, b3)
    out = jax.block_until_ready(out)

    ref = fc_reference(x, w1, b1, w2, b2, w3, b3)
    assert out.shape == (N, Cout)
    assert jnp.allclose(out, ref, atol=1e-4, rtol=1e-4), "Pallas FC mismatch vs reference"

    print("KERNEL_OK")
</pallas_src>

<mosaic_0001>
module attributes {stable_mosaic.version = 11 : i64} {
  func.func @_fc_kernel(%arg0: i32, %arg1: memref<128x128xf32, #tpu.memory_space<vmem>>, %arg2: memref<128x128xf32, #tpu.memory_space<vmem>>, %arg3: memref<1x128xf32, #tpu.memory_space<vmem>>, %arg4: memref<128x128xf32, #tpu.memory_space<vmem>>, %arg5: memref<1x128xf32, #tpu.memory_space<vmem>>, %arg6: memref<128x128xf32, #tpu.memory_space<vmem>>, %arg7: memref<1x128xf32, #tpu.memory_space<vmem>>, %arg8: memref<128x128xf32, #tpu.memory_space<vmem>>) attributes {dimension_semantics = [#tpu.dimension_semantics<parallel>], iteration_bounds = array<i64: 2>, scalar_prefetch = 0 : i64, scratch_operands = 0 : i64, tpu.core_type = #tpu.core_type<tc>, window_params = [{transform_indices = @transform_0, window_bounds = array<i64: 128, 128>}, {pipeline_mode = #tpu.pipeline_mode<synchronous>, transform_indices = @transform_1, window_bounds = array<i64: 128, 128>}, {pipeline_mode = #tpu.pipeline_mode<synchronous>, transform_indices = @transform_2, window_bounds = array<i64: 1, 128>}, {pipeline_mode = #tpu.pipeline_mode<synchronous>, transform_indices = @transform_3, window_bounds = array<i64: 128, 128>}, {pipeline_mode = #tpu.pipeline_mode<synchronous>, transform_indices = @transform_4, window_bounds = array<i64: 1, 128>}, {pipeline_mode = #tpu.pipeline_mode<synchronous>, transform_indices = @transform_5, window_bounds = array<i64: 128, 128>}, {pipeline_mode = #tpu.pipeline_mode<synchronous>, transform_indices = @transform_6, window_bounds = array<i64: 1, 128>}, {transform_indices = @transform_7, window_bounds = array<i64: 128, 128>}]} {
    %c0 = arith.constant 0 : index
    %c0_0 = arith.constant 0 : index
    %0 = vector.load %arg1[%c0, %c0_0] : memref<128x128xf32, #tpu.memory_space<vmem>>, vector<128x128xf32>
    %c0_1 = arith.constant 0 : index
    %c0_2 = arith.constant 0 : index
    %1 = vector.load %arg2[%c0_1, %c0_2] : memref<128x128xf32, #tpu.memory_space<vmem>>, vector<128x128xf32>
    %cst = arith.constant dense<0.000000e+00> : vector<128x128xf32>
    %2 = tpu.matmul %0, %1, %cst {dimension_numbers = #tpu.dot_dimension_numbers<[1], [0], [0], [1], [0, 0, 1, 1], [], []>} : vector<128x128xf32>, vector<128x128xf32>, vector<128x128xf32> -> vector<128x128xf32>
    %c0_3 = arith.constant 0 : index
    %c0_4 = arith.constant 0 : index
    %3 = vector.load %arg3[%c0_3, %c0_4] : memref<1x128xf32, #tpu.memory_space<vmem>>, vector<1x128xf32>
    %4 = vector.broadcast %3 : vector<1x128xf32> to vector<128x128xf32>
    %5 = arith.addf %2, %4 : vector<128x128xf32>
    %cst_5 = arith.constant 5.000000e-01 : f32
    %6 = vector.broadcast %cst_5 : f32 to vector<128x128xf32>
    %7 = arith.mulf %6, %5 : vector<128x128xf32>
    %cst_6 = arith.constant 0.707106769 : f32
    %8 = vector.broadcast %cst_6 : f32 to vector<128x128xf32>
    %9 = arith.mulf %5, %8 : vector<128x128xf32>
    %10 = math.erf %9 : vector<128x128xf32>
    %cst_7 = arith.constant 1.000000e+00 : f32
    %11 = vector.broadcast %cst_7 : f32 to vector<128x128xf32>
    %12 = arith.addf %11, %10 : vector<128x128xf32>
    %13 = arith.mulf %7, %12 : vector<128x128xf32>
    %c0_8 = arith.constant 0 : index
    %c0_9 = arith.constant 0 : index
    %14 = vector.load %arg4[%c0_8, %c0_9] : memref<128x128xf32, #tpu.memory_space<vmem>>, vector<128x128xf32>
    %cst_10 = arith.constant dense<0.000000e+00> : vector<128x128xf32>
    %15 = tpu.matmul %13, %14, %cst_10 {dimension_numbers = #tpu.dot_dimension_numbers<[1], [0], [0], [1], [0, 0, 1, 1], [], []>} : vector<128x128xf32>, vector<128x128xf32>, vector<128x128xf32> -> vector<128x128xf32>
    %c0_11 = arith.constant 0 : index
    %c0_12 = arith.constant 0 : index
    %16 = vector.load %arg5[%c0_11, %c0_12] : memref<1x128xf32, #tpu.memory_space<vmem>>, vector<1x128xf32>
    %17 = vector.broadcast %16 : vector<1x128xf32> to vector<128x128xf32>
    %18 = arith.addf %15, %17 : vector<128x128xf32>
    %cst_13 = arith.constant 5.000000e-01 : f32
    %19 = vector.broadcast %cst_13 : f32 to vector<128x128xf32>
    %20 = arith.mulf %19, %18 : vector<128x128xf32>
    %cst_14 = arith.constant 0.707106769 : f32
    %21 = vector.broadcast %cst_14 : f32 to vector<128x128xf32>
    %22 = arith.mulf %18, %21 : vector<128x128xf32>
    %23 = math.erf %22 : vector<128x128xf32>
    %cst_15 = arith.constant 1.000000e+00 : f32
    %24 = vector.broadcast %cst_15 : f32 to vector<128x128xf32>
    %25 = arith.addf %24, %23 : vector<128x128xf32>
    %26 = arith.mulf %20, %25 : vector<128x128xf32>
    %c0_16 = arith.constant 0 : index
    %c0_17 = arith.constant 0 : index
    %27 = vector.load %arg6[%c0_16, %c0_17] : memref<128x128xf32, #tpu.memory_space<vmem>>, vector<128x128xf32>
    %cst_18 = arith.constant dense<0.000000e+00> : vector<128x128xf32>
    %28 = tpu.matmul %26, %27, %cst_18 {dimension_numbers = #tpu.dot_dimension_numbers<[1], [0], [0], [1], [0, 0, 1, 1], [], []>} : vector<128x128xf32>, vector<128x128xf32>, vector<128x128xf32> -> vector<128x128xf32>
    %c0_19 = arith.constant 0 : index
    %c0_20 = arith.constant 0 : index
    %29 = vector.load %arg7[%c0_19, %c0_20] : memref<1x128xf32, #tpu.memory_space<vmem>>, vector<1x128xf32>
    %30 = vector.broadcast %29 : vector<1x128xf32> to vector<128x128xf32>
    %31 = arith.addf %28, %30 : vector<128x128xf32>
    %c0_21 = arith.constant 0 : index
    %c0_22 = arith.constant 0 : index
    %32 = vector.load %arg8[%c0_21, %c0_22] : memref<128x128xf32, #tpu.memory_space<vmem>>, vector<128x128xf32>
    tpu.vector_store %arg8[%c0_21, %c0_22], %31 {strides = array<i32>} : memref<128x128xf32, #tpu.memory_space<vmem>>, vector<128x128xf32>,
    return
  }
  func.func @transform_0(%arg0: i32) -> (i32, i32) {
    %c0_i32 = arith.constant 0 : i32
    %c0_i32_0 = arith.constant 0 : i32
    return %arg0, %c0_i32 : i32, i32
  }
  func.func @transform_1(%arg0: i32) -> (i32, i32) {
    %c0_i32 = arith.constant 0 : i32
    %c0_i32_0 = arith.constant 0 : i32
    %c0_i32_1 = arith.constant 0 : i32
    return %c0_i32, %c0_i32_0 : i32, i32
  }
  func.func @transform_2(%arg0: i32) -> (i32, i32) {
    %c0_i32 = arith.constant 0 : i32
    %c0_i32_0 = arith.constant 0 : i32
    %c0_i32_1 = arith.constant 0 : i32
    return %c0_i32, %c0_i32_0 : i32, i32
  }
  func.func @transform_3(%arg0: i32) -> (i32, i32) {
    %c0_i32 = arith.constant 0 : i32
    %c0_i32_0 = arith.constant 0 : i32
    %c0_i32_1 = arith.constant 0 : i32
    return %c0_i32, %c0_i32_0 : i32, i32
  }
  func.func @transform_4(%arg0: i32) -> (i32, i32) {
    %c0_i32 = arith.constant 0 : i32
    %c0_i32_0 = arith.constant 0 : i32
    %c0_i32_1 = arith.constant 0 : i32
    return %c0_i32, %c0_i32_0 : i32, i32
  }
  func.func @transform_5(%arg0: i32) -> (i32, i32) {
    %c0_i32 = arith.constant 0 : i32
    %c0_i32_0 = arith.constant 0 : i32
    %c0_i32_1 = arith.constant 0 : i32
    return %c0_i32, %c0_i32_0 : i32, i32
  }
  func.func @transform_6(%arg0: i32) -> (i32, i32) {
    %c0_i32 = arith.constant 0 : i32
    %c0_i32_0 = arith.constant 0 : i32
    %c0_i32_1 = arith.constant 0 : i32
    return %c0_i32, %c0_i32_0 : i32, i32
  }
  func.func @transform_7(%arg0: i32) -> (i32, i32) {
    %c0_i32 = arith.constant 0 : i32
    %c0_i32_0 = arith.constant 0 : i32
    return %arg0, %c0_i32 : i32, i32
  }
}

</mosaic_0001>

<bundles_post_ra>
// kernel: tpu_custom_call.1
= control target key start
LH: loop header
LB: loop body
LE: loop exit
PB: predicated region body
PF: predicated region fallthrough
CT: control target
= control target key end

     0   :  { %12 = vsyncpa [#allocation3], 0  ;;  %s2343_s0 = inlined_call_operand.hbm [shape: f32[256,128], index: 0, kind: input, shape index: {}]   ;;  %s2344_s1 = inlined_call_operand.hbm [shape: f32[128,128], index: 1, kind: input, shape index: {}]   ;;  %s2345_s2 = inlined_call_operand.vmem [shape: f32[1,128], index: 2, kind: input, shape index: {}]   ;;  %s2346_s3 = inlined_call_operand.hbm [shape: f32[128,128], index: 3, kind: input, shape index: {}]   ;;  %s2347_s4 = inlined_call_operand.vmem [shape: f32[1,128], index: 4, kind: input, shape index: {}]   ;;  %s2348_s5 = inlined_call_operand.hbm [shape: f32[128,128], index: 5, kind: input, shape index: {}]   ;;  %s2349_s6 = inlined_call_operand.vmem [shape: f32[1,128], index: 6, kind: input, shape index: {}]   ;;  %s2350_s7 = inlined_call_operand.hbm [shape: f32[256,128], index: 7, kind: output, shape index: {}]  }
   0x1   :  { %14 = vsyncpa [#allocation3 + $0x1], 0 }
   0x2   :  { %15 = vsyncpa [#allocation6], 0 }
   0x3   :  { %16 = vsyncpa [#allocation9], 0 }
   0x4   :  { %17 = vsyncpa [#allocation4], 0 }
   0x5   :  { %19 = vsyncpa [#allocation4 + $0x1], 0  ;;  %s1940_s24 = smov 0   ;;  %s1942_s25 = smov 0  }
   0x6   :  { %s1944_s26 = smov 0   ;;  %s1946_s27 = smov 0  }
   0x7 LB: > { %s1961_s28 = sadd.s32 4294967295, %s1889_s27   ;;  %s1155_s29 = sadd.s32 4294967294, %s1889_s27   ;;  %s1889_s27 = sphi %s1946_s27, %s2376_s27   ;;  %s1885_s26 = sphi %s1944_s26, %s2375_s26   ;;  %s1881_s25 = sphi %s1942_s25, %s2374_s25   ;;  %s1877_s24 = sphi %s1940_s24, %s2373_s24  }
   0x8   : > { %p45_p0 = scmp.ne.s32.totalorder %s1881_s25, %s1877_s24  ;;  %p2351_p1 = scmp.eq.s32.totalorder %s1961_s28, 0 }
   0x9   : > { %p201_p3 = scmp.eq.s32.totalorder %s1155_s29, 1  ;;  %p1156_p5 = scmp.ge.s32.totalorder %s1889_s27, 1 }
   0xa   : > { %p1970_p4 = por %p2351_p1, %p45_p0  ;;  %p208_p7 = scmp.lt.s32.totalorder %s1889_s27, 3 }
   0xb   : > { %p1975_p6 = por %p201_p3, %p45_p0  ;;  %s1891_s10 = smov [#allocation5]  }
   0xc   : > { %s2355_s30 = scalar_select %p1970_p4, 1, 0 }
   0xd   : > { %s2356_s8 = scalar_select %p1975_p6, 1, 0 }
   0xe   : > { %p1980_p8 = pnand %p1156_p5, %p208_p7  ;;  %s220_s11 = sshll.u32 %s1891_s10, 4  ;;  %s1984_s11 = int_to_ptr.vmem [resolvable:$true] %s220_s11 }
   0xf   : > { %2357 = sst [smem:[#allocation15_spill]] %s2356_s8  ;;  %s1892_s13 = smov [#allocation7]  }
  0x10   : > { %s2358_s9 = scalar_select %p1980_p8, 1, 0 }
  0x11   : > { %p1572_p9 = pneg %p1980_p8  ;;  %s236_s14 = sshll.u32 %s1892_s13, 4  ;;  %s1995_s14 = int_to_ptr.vmem [resolvable:$true] %s236_s14 }
  0x12   : > { %s1893_s15 = smov [#allocation8]   ;;  %s1701_s19 = scalar_lea.hbm %s2344_s1, 2048 }
  0x13   : > { %p1991_p11 = pnand %p1572_p9, %p2351_p1  ;;  %s1997_s16 = sshll.u32 %s1893_s15, 4  ;;  %s253_s16 = int_to_ptr.vmem [resolvable:$true] %s1997_s16 }
  0x14   : > { %p1702_p12 = scmp.ne.s32.totalorder %s2344_s1, %s1701_s19  ;;  %p1708_p5 = scmp.lt.u32.totalorder %s1701_s19, %s2344_s1 }
  0x15   : > { %p2007_p13 = pneg %p1991_p11 }
  0x17   : > { %p1704_p0 = pnand %p2007_p13, %p1702_p12 }
  0x19   : > { %p1705_p3 = pneg %p1704_p0 }
  0x1b   : > { %p1710_p7 = pnand %p1708_p5, %p1705_p3 }
  0x1d   : > { %1713 = shalt.err (!%p1710_p7)
}
  0x1e   : > { %s1714_s10 = scalar_lea.vmem %s1984_s11, 2048  ;;  %p1722_p2 = scmp.lt.s32.totalorder %s1984_s11, %s1984_s11 }
  0x1f   : > { %p1715_p9 = scmp.ne.s32.totalorder %s1984_s11, %s1714_s10  ;;  %p1723_p6 = scmp.lt.s32.totalorder %s1714_s10, %s1714_s10 }
  0x21   : > { %p1717_p10 = pnand %p1715_p9, %p2007_p13  ;;  %p1724_p12 = por %p1723_p6, %p1722_p2 }
  0x23   : > { %p1718_p1 = pneg %p1717_p10 }
  0x25   : > { %p1725_p0 = pnand %p1724_p12, %p1718_p1 }
  0x27   : > { %1728 = shalt.err (!%p1725_p0)
}
  0x28   : > { %s1894_s13 = smov 128   ;;  %s1895_s15 = smov 8  }
  0x29   : > { %1575 = dma.hbm_to_vmem [thread:$0]  (!%p1991_p11), %s2344_s1, 2048, %s1984_s11, [#allocation6], %s1894_s13, %s1894_s13, %s1895_s15  }
  0x2a   : > { %s1729_s21 = scalar_lea.hbm %s2346_s3, 2048 }
  0x2b   : > { %p1730_p1 = scmp.ne.s32.totalorder %s2346_s3, %s1729_s21  ;;  %p1736_p10 = scmp.lt.u32.totalorder %s1729_s21, %s2346_s3 }
  0x2d   : > { %p1732_p2 = pnand %p1730_p1, %p2007_p13 }
  0x2f   : > { %p1733_p6 = pneg %p1732_p2 }
  0x31   : > { %p1738_p3 = pnand %p1736_p10, %p1733_p6 }
  0x33   : > { %1741 = shalt.err (!%p1738_p3)
}
  0x34   : > { %s1742_s11 = scalar_lea.vmem %s1995_s14, 2048  ;;  %p1750_p12 = scmp.lt.s32.totalorder %s1995_s14, %s1995_s14 }
  0x35   : > { %p1743_p5 = scmp.ne.s32.totalorder %s1995_s14, %s1742_s11  ;;  %p1751_p0 = scmp.lt.s32.totalorder %s1742_s11, %s1742_s11 }
  0x37   : > { %p1745_p7 = pnand %p1743_p5, %p2007_p13  ;;  %p1752_p1 = por %p1751_p0, %p1750_p12 }
  0x39   : > { %p1746_p9 = pneg %p1745_p7 }
  0x3b   : > { %p1753_p2 = pnand %p1752_p1, %p1746_p9 }
  0x3d   : > { %1756 = shalt.err (!%p1753_p2)
}
  0x3e   : > { %1578 = dma.hbm_to_vmem [thread:$0]  (!%p1991_p11), %s2346_s3, 2048, %s1995_s14, [#allocation6], %s1894_s13, %s1894_s13, %s1895_s15  }
  0x3f   : > { %s1757_s20 = scalar_lea.hbm %s2348_s5, 2048 }
  0x40   : > { %p1758_p6 = scmp.ne.s32.totalorder %s2348_s5, %s1757_s20  ;;  %p1764_p5 = scmp.lt.u32.totalorder %s1757_s20, %s2348_s5 }
  0x42   : > { %p1760_p10 = pnand %p1758_p6, %p2007_p13 }
  0x44   : > { %p1761_p3 = pneg %p1760_p10 }
  0x46   : > { %p1766_p7 = pnand %p1764_p5, %p1761_p3 }
  0x48   : > { %1769 = shalt.err (!%p1766_p7)
}
  0x49   : > { %s1770_s11 = scalar_lea.vmem %s253_s16, 2048  ;;  %p1778_p1 = scmp.lt.s32.totalorder %s253_s16, %s253_s16 }
  0x4a   : > { %p1771_p9 = scmp.ne.s32.totalorder %s253_s16, %s1770_s11  ;;  %p1779_p2 = scmp.lt.s32.totalorder %s1770_s11, %s1770_s11 }
  0x4c   : > { %p1773_p12 = pnand %p1771_p9, %p2007_p13  ;;  %p1780_p4 = por %p1779_p2, %p1778_p1 }
  0x4e   : > { %p1774_p0 = pneg %p1773_p12 }
  0x50   : > { %p1781_p8 = pnand %p1780_p4, %p1774_p0 }
  0x52   : > { %1784 = shalt.err (!%p1781_p8)
}
  0x53   : > { %1581 = dma.hbm_to_vmem [thread:$0]  (!%p1991_p11), %s2348_s5, 2048, %s253_s16, [#allocation9], %s1894_s13, %s1894_s13, %s1895_s15  }
  0x54   : > { %s2080_s22 = sadd.s32 1, %s1889_s27   ;;  %s32_s17 = sadd.s32 1, %s1885_s26 }
  0x55   : > { %s29_s12 = ssub.s32 %s1889_s27, %s2080_s22  ;;  %p39_p8 = scmp.ne.s32.totalorder %s1885_s26, %s1881_s25 }
  0x56   : > { %p30_p4 = scmp.eq.s32.totalorder %s29_s12, 0  ;;  %p40_p13 = scmp.eq.s32.totalorder %s1889_s27, 0 }
  0x57   : > { %p1593_p6 = scmp.lt.s32.totalorder %s1889_s27, 2  ;;  %p2361_p3 = scmp.eq.s32.totalorder %s1961_s28, 1 }
  0x58   : > { %s2090_s18 = scalar_select %p30_p4, %s1885_s26, %s32_s17  }
  0x59   : > { %p41_p10 = por %p40_p13, %p39_p8  ;;  %p2094_p5 = por %p2361_p3, %p39_p8 }
  0x5a   : > { %s269_s20 = sand.u32 1, %s1885_s26   ;;  %s1178_s21 = sshll.u32 %s1889_s27, 11 }
  0x5b   : > { %s1161_s16 = sshll.u32 %s269_s20, 7  ;;  %s2103_s10 = scalar_lea.hbm %s2343_s0, %s1178_s21 }
  0x5c   : > { %s273_s11 = scalar_lea.vmem [#allocation2], %s1161_s16  ;;  %p2105_p11 = pnand %p1593_p6, %p41_p10 }
  0x5d   : > { %s280_s14 = sshll.u32 %s273_s11, 4  ;;  %s2111_s12 = scalar_lea.sflag [#allocation3], %s269_s20  ;;  %s2109_s14 = int_to_ptr.vmem [resolvable:$true] %s280_s14 }
  0x5e   : > { %s1785_s17 = scalar_lea.hbm %s2103_s10, 2048  ;;  %p1787_p9 = pneg %p2105_p11 }
  0x5f   : > { %p1786_p7 = scmp.ne.s32.totalorder %s2103_s10, %s1785_s17  ;;  %s1790_s23 = scalar_lea.hbm %s2343_s0, 4096 }
  0x60   : > { %p1791_p1 = scmp.lt.u32.totalorder %s2103_s10, %s2343_s0  ;;  %p1792_p2 = scmp.lt.u32.totalorder %s1790_s23, %s1785_s17 }
  0x61   : > { %p1788_p12 = pnand %p1787_p9, %p1786_p7  ;;  %p1794_p8 = scmp.lt.u32.totalorder %s1785_s17, %s2103_s10 }
  0x62   : > { %p1793_p4 = por %p1792_p2, %p1791_p1 }
  0x63   : > { %p1789_p0 = pneg %p1788_p12 }
  0x64   : > { %p1795_p13 = por %p1794_p8, %p1793_p4 }
  0x66   : > { %p1796_p6 = pnand %p1795_p13, %p1789_p0 }
  0x68   : > { %1799 = shalt.err (!%p1796_p6)
}
  0x69   : > { %s1800_s20 = scalar_lea.vmem %s2109_s14, 2048  ;;  %s1896_s21 = smov [#allocation2]  }
  0x6a   : > { %p1801_p10 = scmp.ne.s32.totalorder %s2109_s14, %s1800_s20  ;;  %s1805_s16 = sshll.u32 %s1896_s21, 4  ;;  %s1806_s16 = int_to_ptr.vmem [resolvable:$false] %s1805_s16 }
  0x6b   : > { %s1807_s29 = scalar_lea.vmem %s1806_s16, 4096  ;;  %p1808_p12 = scmp.lt.s32.totalorder %s2109_s14, %s1806_s16 }
  0x6c   : > { %p1803_p3 = pnand %p1801_p10, %p1787_p9  ;;  %p1809_p1 = scmp.lt.s32.totalorder %s1807_s29, %s1800_s20 }
  0x6e   : > { %p1804_p7 = pneg %p1803_p3  ;;  %p1810_p2 = por %p1809_p1, %p1808_p12 }
  0x70   : > { %p1811_p4 = pnand %p1810_p2, %p1804_p7 }
  0x72   : > { %1814 = shalt.err (!%p1811_p4)
}
  0x73   : > { %1585 = dma.hbm_to_vmem [thread:$0]  (!%p2105_p11), %s2103_s10, 2048, %s2109_s14, %s2111_s12, %s1894_s13, %s1894_s13, %s1895_s15  }
  0x74   : > { %p2364_p9 = scmp.ne.s32.totalorder %s2358_s9, 0 }
  0x75   : > { %s2145_s17 = sand.u32 (!%p2364_p9), 1, %s1881_s25   ;;  %p2365_p0 = scmp.ne.s32.totalorder (!%p2364_p9), %s2355_s30, 0 }
  0x76   : > { %292 = sbr.rel (%p2364_p9) target bundleno = 892 (0x37c), region = 48  ;;  %s1165_s23 = sshll.u32 (!%p2364_p9), %s2145_s17, 7 }
  0x77   : > { %s295_s11 = scalar_lea.sflag (!%p2364_p9), [#allocation3], %s2145_s17  ;;  %s2151_s8 = scalar_lea.vmem (!%p2364_p9), [#allocation2], %s1165_s23 }
  0x7d   : > { %1860 = dma.done.wait (%p2365_p0), %s295_s11, 2048  }
  0x7e   : > { %1862 = vsyncadd (%p2365_p0), %s295_s11, 4294965248  ;;  %p2366_p11 = scmp.eq.s32.totalorder %s1961_s28, 0 }
  0x80   : > { %1864 = dma.done.wait (%p2366_p11), [#allocation6], 4096   ;;  %p2367_p8 = pmov %p2366_p11 }
  0x82   : > { %1866 = vsyncadd (%p2367_p8), [#allocation6], 4294963200  ;;  %p2368_p13 = pmov %p2367_p8 }
  0x83   : > { %p2369_p6 = pmov %p2367_p8 }
  0x84   : > { %1868 = dma.done.wait (%p2368_p13), [#allocation9], 2048  }
  0x85   : > { %1870 = vsyncadd (%p2369_p6), [#allocation9], 4294965248  ;;  %v359_v0 = vld [vmem:[#allocation5] sm:$0xff]  ;;  %v360_v1 = vld [vmem:[#allocation5 + $0x8] sm:$0xff]  ;;  %s2274_s12 = scalar_lea.vmem [#allocation10], %s1165_s23  ;;  %s1179_s20 = sshll.u32 %s1961_s28, 11 }
  0x86   : > { %v361_v2 = vld [vmem:[#allocation5 + $0x10] sm:$0xff]  ;;  %v1444_v3 = vpack.c.bf16 %v360_v1, %v359_v0  ;;  %v362_v4 = vld [vmem:[#allocation5 + $0x18] sm:$0xff]  ;;  %v363_v6 = vld [vmem:[#allocation5 + $0x20] sm:$0xff]  ;;  %s1053_s21 = sshll.u32 %s2274_s12, 4  ;;  %s2295_s23 = scalar_lea.hbm %s2350_s7, %s1179_s20  ;;  %s2297_s21 = int_to_ptr.vmem [resolvable:$true] %s1053_s21 }
  0x87   : > { %v1448_v5 = vpack.c.bf16 %v362_v4, %v361_v2  ;;  %v364_v7 = vld [vmem:[#allocation5 + $0x28] sm:$0xff]  ;;  %v343_v9 = vld [vmem:[%s2151_s8] sm:$0xff]  ;;  %v365_v10 = vld [vmem:[#allocation5 + $0x30] sm:$0xff]  ;;  %s1040_s28 = scalar_lea.sflag [#allocation4], %s2145_s17  ;;  %s1815_s11 = scalar_lea.vmem %s2297_s21, 2048 }
  0x88   : > { %1445 = vmatprep.subr.bf16.mxu0 %v1444_v3  ;;  %v1452_v8 = vpack.c.bf16 %v364_v7, %v363_v6  ;;  %v366_v11 = vld [vmem:[#allocation5 + $0x38] sm:$0xff]  ;;  %1308 = vmatprep.mubr.f32.mxu0 %v343_v9  ;;  %v367_v13 = vld [vmem:[#allocation5 + $0x40] sm:$0xff]  ;;  %v368_v14 = vld [vmem:[#allocation5 + $0x48] sm:$0xff]  ;;  %p1816_p10 = scmp.ne.s32.totalorder %s2297_s21, %s1815_s11 }
  0x89   : > { %1447 = vmatpush3.bf16.msra.mxu0 %v1444_v3  ;;  %v1456_v12 = vpack.c.bf16 %v366_v11, %v365_v10  ;;  %v607_v15 = vld [vmem:[#allocation7] sm:$0xff]  ;;  %v608_v16 = vld [vmem:[#allocation7 + $0x8] sm:$0xff]  ;;  %v609_v17 = vld [vmem:[#allocation7 + $0x10] sm:$0xff]  ;;  %v1460_v21 = vpack.c.bf16 %v368_v14, %v367_v13 }
  0x8a   : > { %1449 = vmatprep.subr.bf16.mxu0 %v1448_v5  ;;  %v610_v18 = vld [vmem:[#allocation7 + $0x18] sm:$0xff]  ;;  %v1476_v19 = vpack.c.bf16 %v608_v16, %v607_v15  ;;  %v611_v22 = vld [vmem:[#allocation7 + $0x20] sm:$0xff]  ;;  %v612_v23 = vld [vmem:[#allocation7 + $0x28] sm:$0xff]  ;;  %p1817_p3 = pnand %p1816_p10, %p2094_p5 }
  0x8b   : > { %v1480_v20 = vpack.c.bf16 %v610_v18, %v609_v17  ;;  %v369_v24 = vld [vmem:[#allocation5 + $0x50] sm:$0xff]  ;;  %v370_v25 = vld [vmem:[#allocation5 + $0x58] sm:$0xff]  ;;  %v1484_v26 = vpack.c.bf16 %v612_v23, %v611_v22  ;;  %v371_v28 = vld [vmem:[#allocation5 + $0x60] sm:$0xff] }
  0x8c   : > { %1477 = vmatprep.subr.bf16.mxu1 %v1476_v19  ;;  %v1464_v27 = vpack.c.bf16 %v370_v25, %v369_v24  ;;  %v372_v29 = vld [vmem:[#allocation5 + $0x68] sm:$0xff]  ;;  %v373_v31 = vld [vmem:[#allocation5 + $0x70] sm:$0xff]  ;;  %v374_v32 = vld [vmem:[#allocation5 + $0x78] sm:$0xff]  ;;  %p1818_p7 = pneg %p1817_p3 }
  0x8d   : > { %1451 = vmatpush3.bf16.msra.mxu0 %v1448_v5  ;;  %1479 = vmatpush3.bf16.msra.mxu1 %v1476_v19  ;;  %v1468_v30 = vpack.c.bf16 %v372_v29, %v371_v28  ;;  %v1472_v33 = vpack.c.bf16 %v374_v32, %v373_v31  ;;  %v344_v34 = vld [vmem:[%s2151_s8 + $0x8] sm:$0xff]  ;;  %v345_v35 = vld [vmem:[%s2151_s8 + $0x10] sm:$0xff]  ;;  %v346_v36 = vld [vmem:[%s2151_s8 + $0x18] sm:$0xff] }
  0x8e   : > { %1453 = vmatprep.subr.bf16.mxu0 %v1452_v8  ;;  %1481 = vmatprep.subr.bf16.mxu1 %v1480_v20  ;;  %v347_v37 = vld [vmem:[%s2151_s8 + $0x20] sm:$0xff]  ;;  %v348_v38 = vld [vmem:[%s2151_s8 + $0x28] sm:$0xff]  ;;  %v349_v39 = vld [vmem:[%s2151_s8 + $0x30] sm:$0xff] }
  0x8f   : > { %v350_v40 = vld [vmem:[%s2151_s8 + $0x38] sm:$0xff]  ;;  %v351_v41 = vld [vmem:[%s2151_s8 + $0x40] sm:$0xff]  ;;  %v352_v42 = vld [vmem:[%s2151_s8 + $0x48] sm:$0xff] }
  0x90   : > { %v353_v43 = vld [vmem:[%s2151_s8 + $0x50] sm:$0xff]  ;;  %v354_v44 = vld [vmem:[%s2151_s8 + $0x58] sm:$0xff]  ;;  %v355_v45 = vld [vmem:[%s2151_s8 + $0x60] sm:$0xff] }
  0x91   : > { %1455 = vmatpush3.bf16.msra.mxu0 %v1452_v8  ;;  %1483 = vmatpush3.bf16.msra.mxu1 %v1480_v20  ;;  %v356_v46 = vld [vmem:[%s2151_s8 + $0x68] sm:$0xff]  ;;  %v357_v47 = vld [vmem:[%s2151_s8 + $0x70] sm:$0xff]  ;;  %v358_v48 = vld [vmem:[%s2151_s8 + $0x78] sm:$0xff]  ;;  %s1897_s8 = smov [#allocation10]  }
  0x92   : > { %1457 = vmatprep.subr.bf16.mxu0 %v1456_v12  ;;  %1485 = vmatprep.subr.bf16.mxu1 %v1484_v26  ;;  %v613_v49 = vld [vmem:[#allocation7 + $0x30] sm:$0xff]  ;;  %v614_v50 = vld [vmem:[#allocation7 + $0x38] sm:$0xff]  ;;  %v615_v52 = vld [vmem:[#allocation7 + $0x40] sm:$0xff]  ;;  %s1819_s30 = sshll.u32 %s1897_s8, 4  ;;  %s1820_s30 = int_to_ptr.vmem [resolvable:$false] %s1819_s30 }
  0x93   : > { %v1488_v51 = vpack.c.bf16 %v614_v50, %v613_v49  ;;  %v616_v53 = vld [vmem:[#allocation7 + $0x48] sm:$0xff]  ;;  %v617_v55 = vld [vmem:[#allocation7 + $0x50] sm:$0xff]  ;;  %v618_v56 = vld [vmem:[#allocation7 + $0x58] sm:$0xff]  ;;  %s1821_s9 = scalar_lea.vmem %s1820_s30, 4096  ;;  %p1822_p12 = scmp.lt.s32.totalorder %s2297_s21, %s1820_s30 }
  0x94   : > { %v1492_v54 = vpack.c.bf16 %v616_v53, %v615_v52  ;;  %v1496_v57 = vpack.c.bf16 %v618_v56, %v617_v55  ;;  %v619_v58 = vld [vmem:[#allocation7 + $0x60] sm:$0xff]  ;;  %v620_v59 = vld [vmem:[#allocation7 + $0x68] sm:$0xff]  ;;  %v621_v61 = vld [vmem:[#allocation7 + $0x70] sm:$0xff]  ;;  %p1823_p1 = scmp.lt.s32.totalorder %s1821_s9, %s1815_s11 }
  0x95   : > { %1459 = vmatpush3.bf16.msra.mxu0 %v1456_v12  ;;  %1487 = vmatpush3.bf16.msra.mxu1 %v1484_v26  ;;  %v1500_v60 = vpack.c.bf16 %v620_v59, %v619_v58  ;;  %v622_v62 = vld [vmem:[#allocation7 + $0x78] sm:$0xff]  ;;  %v855_v0 = vld [vmem:[#allocation8] sm:$0xff]  ;;  %v856_v1 = vld [vmem:[#allocation8 + $0x8] sm:$0xff] }
  0x96   : > { %1461 = vmatprep.subr.bf16.mxu0 %v1460_v21  ;;  %1489 = vmatprep.subr.bf16.mxu1 %v1488_v51  ;;  %v1504_v63 = vpack.c.bf16 %v622_v62, %v621_v61  ;;  %v857_v2 = vld [vmem:[#allocation8 + $0x10] sm:$0xff]  ;;  %v2181_v3 = vpack.c.bf16 %v856_v1, %v855_v0  ;;  %v858_v4 = vld [vmem:[#allocation8 + $0x18] sm:$0xff]  ;;  %v859_v6 = vld [vmem:[#allocation8 + $0x20] sm:$0xff]  ;;  %p1824_p2 = por %p1823_p1, %p1822_p12 }
  0x97   : > { %v2183_v5 = vpack.c.bf16 %v858_v4, %v857_v2  ;;  %v860_v7 = vld [vmem:[#allocation8 + $0x28] sm:$0xff]  ;;  %v2197_v9 = vld [vmem:[%s2345_s2] ss:$0 sm:$0xff] }
  0x98   : > { %v2189_v8 = vpack.c.bf16 %v860_v7, %v859_v6  ;;  %p1825_p4 = pnand %p1824_p2, %p1818_p7 }
  0x99   : > { %1463 = vmatpush3.bf16.msra.mxu0 %v1460_v21  ;;  %1491 = vmatpush3.bf16.msra.mxu1 %v1488_v51 }
  0x9a   : > { %1465 = vmatprep.subr.bf16.mxu0 %v1464_v27  ;;  %1493 = vmatprep.subr.bf16.mxu1 %v1492_v54 }
  0x9d   : > { %1467 = vmatpush3.bf16.msra.mxu0 %v1464_v27  ;;  %1495 = vmatpush3.bf16.msra.mxu1 %v1492_v54 }
  0x9e   : > { %1469 = vmatprep.subr.bf16.mxu0 %v1468_v30  ;;  %1497 = vmatprep.subr.bf16.mxu1 %v1496_v57 }
  0xa1   : > { %1471 = vmatpush3.bf16.msra.mxu0 %v1468_v30  ;;  %1499 = vmatpush3.bf16.msra.mxu1 %v1496_v57 }
  0xa2   : > { %1473 = vmatprep.subr.bf16.mxu0 %v1472_v33  ;;  %1501 = vmatprep.subr.bf16.mxu1 %v1500_v60 }
  0xa5   : > { %1475 = vmatpush3.bf16.msra.mxu0 %v1472_v33  ;;  %1503 = vmatpush3.bf16.msra.mxu1 %v1500_v60 }
  0xa6   : > { %1505 = vmatprep.subr.bf16.mxu1 %v1504_v63  ;;  %1509 = vmatprep.subr.bf16.mxu0 %v2181_v3 }
  0xa8   : > { %1309 = vmatmul.mubr.f32.vlgmr.msra.gmra.mrb[0].mxu0 %v344_v34 }
  0xa9   : > { %1311 = vmatprep.mubr.f32.mxu0 %v345_v35  ;;  %1507 = vmatpush3.bf16.msra.mxu1 %v1504_v63 }
  0xaa   : > { %1540 = vmatprep.subr.bf16.mxu1 %v2181_v3  ;;  %1511 = vmatpush3.bf16.msra.mxu0 %v2181_v3 }
  0xab   : > { %1513 = vmatprep.subr.bf16.mxu0 %v2183_v5 }
  0xac   : > { %1312 = vmatmul.mubr.f32.gmra.mrb[2].mxu0 %v346_v36 }
  0xad   : > { %1314 = vmatprep.mubr.f32.mxu0 %v347_v37 }
  0xae   : > { %1515 = vmatpush3.bf16.msra.mxu0 %v2183_v5 }
  0xaf   : > { %1517 = vmatprep.subr.bf16.mxu0 %v2189_v8 }
  0xb0   : > { %1315 = vmatmul.mubr.f32.gmra.mrb[4].mxu0 %v348_v38 }
  0xb1   : > { %1317 = vmatprep.mubr.f32.mxu0 %v349_v39 }
  0xb2   : > { %1519 = vmatpush3.bf16.msra.mxu0 %v2189_v8 }
  0xb4   : > { %1318 = vmatmul.mubr.f32.gmra.mrb[6].mxu0 %v350_v40 }
  0xb5   : > { %1320 = vmatprep.mubr.f32.mxu0 %v351_v41 }
  0xb8   : > { %1321 = vmatmul.mubr.f32.gmra.mrb[8].mxu0 %v352_v42 }
  0xb9   : > { %1323 = vmatprep.mubr.f32.mxu0 %v353_v43 }
  0xbc   : > { %1324 = vmatmul.mubr.f32.gmra.mrb[10].mxu0 %v354_v44 }
  0xbd   : > { %1326 = vmatprep.mubr.f32.mxu0 %v355_v45 }
  0xc0   : > { %1327 = vmatmul.mubr.f32.gmra.mrb[12].mxu0 %v356_v46 }
  0xc1   : > { %1329 = vmatprep.mubr.f32.mxu0 %v357_v47 }
  0xc4   : > { %1330 = vmatmul.mubr.f32.gmra.mrb[14].mxu0 %v358_v48 }
 0x17b   : > { %v1310_v10 = vpop.f32.mrb[0].mxu0 }
 0x17c   : > { %v454_v11 = vadd.f32 %v1310_v10, %v2197_v9  ;;  %v448_v12 = vpop.f32.mrb[1].mxu0 }
 0x17d   : > { %v449_v13 = vadd.f32 %v2197_v9, %v448_v12 }
 0x17e   : > { %v544_v14 = vmul.f32 0.70710677, %v454_v11  ;;  %v528_v42 = vmul.f32 0.5, %v454_v11 }
 0x17f   : > { %v543_v15 = vmul.f32 0.70710677, %v449_v13  ;;  %v1313_v16 = vpop.f32.mrb[2].mxu0  ;;  %v527_v40 = vmul.f32 0.5, %v449_v13 }
 0x180   : > { %1637 = verf.f32 %v544_v14  ;;  %v464_v17 = vadd.f32 %v1313_v16, %v2197_v9  ;;  %v458_v18 = vpop.f32.mrb[3].mxu0 }
 0x181   : > { %1639 = verf.f32 %v543_v15  ;;  %v459_v19 = vadd.f32 %v2197_v9, %v458_v18 }
 0x182   : > { %v546_v20 = vmul.f32 0.70710677, %v464_v17  ;;  %v530_v56 = vmul.f32 0.5, %v464_v17 }
 0x183   : > { %v545_v21 = vmul.f32 0.70710677, %v459_v19  ;;  %v1316_v22 = vpop.f32.mrb[4].mxu0  ;;  %v529_v52 = vmul.f32 0.5, %v459_v19 }
 0x184   : > { %1641 = verf.f32 %v546_v20  ;;  %v474_v23 = vadd.f32 %v1316_v22, %v2197_v9  ;;  %v468_v24 = vpop.f32.mrb[5].mxu0 }
 0x185   : > { %1643 = verf.f32 %v545_v21  ;;  %v469_v25 = vadd.f32 %v2197_v9, %v468_v24 }
 0x186   : > { %v548_v26 = vmul.f32 0.70710677, %v474_v23  ;;  %v532_v10 = vmul.f32 0.5, %v474_v23 }
 0x187   : > { %v547_v27 = vmul.f32 0.70710677, %v469_v25  ;;  %v1319_v28 = vpop.f32.mrb[6].mxu0  ;;  %v531_v2 = vmul.f32 0.5, %v469_v25 }
 0x188   : > { %1645 = verf.f32 %v548_v26  ;;  %v2206_v29 = vadd.f32 %v1319_v28, %v2197_v9  ;;  %v478_v30 = vpop.f32.mrb[7].mxu0 }
 0x189   : > { %1647 = verf.f32 %v547_v27  ;;  %v479_v31 = vadd.f32 %v2197_v9, %v478_v30 }
 0x18a   : > { %v1638_v32 = vpop.eup %1637  ;;  %v550_v33 = vmul.f32 0.70710677, %v2206_v29  ;;  %v534_v23 = vmul.f32 0.5, %v2206_v29 }
 0x18b   : > { %v1640_v34 = vpop.eup %1639  ;;  %v576_v35 = vadd.f32 1.0, %v1638_v32  ;;  %v549_v36 = vmul.f32 0.70710677, %v479_v31  ;;  %v1322_v37 = vpop.f32.mrb[8].mxu0  ;;  %v533_v19 = vmul.f32 0.5, %v479_v31 }
 0x18c   : > { %1649 = verf.f32 %v550_v33  ;;  %v2211_v38 = vadd.f32 %v1322_v37, %v2197_v9  ;;  %v488_v39 = vpop.f32.mrb[9].mxu0  ;;  %v575_v41 = vadd.f32 1.0, %v1640_v34 }
 0x18d   : > { %1651 = verf.f32 %v549_v36  ;;  %v2214_v43 = vadd.f32 %v2197_v9, %v488_v39  ;;  %v592_v51 = vmul.f32 %v576_v35, %v528_v42 }
 0x18e   : > { %v1642_v44 = vpop.eup %1641  ;;  %v552_v45 = vmul.f32 0.70710677, %v2211_v38  ;;  %v591_v46 = vmul.f32 %v575_v41, %v527_v40  ;;  %v536_v29 = vmul.f32 0.5, %v2211_v38 }
 0x18f   : > { %v1644_v47 = vpop.eup %1643  ;;  %v578_v48 = vadd.f32 1.0, %v1642_v44  ;;  %v551_v49 = vmul.f32 0.70710677, %v2214_v43  ;;  %v1325_v50 = vpop.f32.mrb[10].mxu0  ;;  %v535_v32 = vmul.f32 0.5, %v2214_v43 }
 0x190   : > { %v577_v53 = vadd.f32 1.0, %v1644_v47  ;;  %1653 = verf.f32 %v552_v45  ;;  %v2219_v54 = vadd.f32 %v1325_v50, %v2197_v9  ;;  %v498_v55 = vpop.f32.mrb[11].mxu0  ;;  %1364 = vmatprep.mubr.f32.mxu1 %v591_v46 }
 0x191   : > { %1655 = verf.f32 %v551_v49  ;;  %v499_v57 = vadd.f32 %v2197_v9, %v498_v55  ;;  %1365 = vmatmul.mubr.f32.vlgmr.msra.gmra.mrb[0].mxu1 %v592_v51  ;;  %v594_v1 = vmul.f32 %v578_v48, %v530_v56 }
 0x192   : > { %v1646_v58 = vpop.eup %1645  ;;  %v554_v59 = vmul.f32 0.70710677, %v2219_v54  ;;  %v593_v60 = vmul.f32 %v577_v53, %v529_v52  ;;  %1548 = vmatpush3.bf16.msra.mxu1 %v2181_v3  ;;  %v538_v40 = vmul.f32 0.5, %v2219_v54 }
 0x193   : > { %v1648_v61 = vpop.eup %1647  ;;  %v580_v62 = vadd.f32 1.0, %v1646_v58  ;;  %v553_v63 = vmul.f32 0.70710677, %v499_v57  ;;  %v1328_v0 = vpop.f32.mrb[12].mxu0  ;;  %1541 = vmatprep.subr.bf16.mxu1 %v2183_v5  ;;  %v537_v39 = vmul.f32 0.5, %v499_v57  ;;  %v861_v58 = vld [vmem:[#allocation8 + $0x30] sm:$0xff] }
 0x194   : > { %v579_v4 = vadd.f32 1.0, %v1648_v61  ;;  %1657 = verf.f32 %v554_v59  ;;  %v514_v6 = vadd.f32 %v1328_v0, %v2197_v9  ;;  %v508_v7 = vpop.f32.mrb[13].mxu0  ;;  %1367 = vmatprep.mubr.f32.mxu1 %v593_v60  ;;  %v862_v59 = vld [vmem:[#allocation8 + $0x38] sm:$0xff]  ;;  %v863_v61 = vld [vmem:[#allocation8 + $0x40] sm:$0xff]  ;;  %v865_v0 = vld [vmem:[#allocation8 + $0x50] sm:$0xff] }
 0x195   : > { %1659 = verf.f32 %v553_v63  ;;  %v509_v11 = vadd.f32 %v2197_v9, %v508_v7  ;;  %1368 = vmatmul.mubr.f32.gmra.mrb[2].mxu1 %v594_v1  ;;  %v596_v18 = vmul.f32 %v580_v62, %v532_v10  ;;  %v1520_v60 = vpack.c.bf16 %v862_v59, %v861_v58  ;;  %v864_v62 = vld [vmem:[#allocation8 + $0x48] sm:$0xff]  ;;  %v866_v1 = vld [vmem:[#allocation8 + $0x58] sm:$0xff]  ;;  %v869_v10 = vld [vmem:[#allocation8 + $0x70] sm:$0xff] }
 0x196   : > { %v1650_v3 = vpop.eup %1649  ;;  %v556_v12 = vmul.f32 0.70710677, %v514_v6  ;;  %v595_v13 = vmul.f32 %v579_v4, %v531_v2  ;;  %1549 = vmatpush3.bf16.msra.mxu1 %v2183_v5  ;;  %v540_v47 = vmul.f32 0.5, %v514_v6  ;;  %v1524_v63 = vpack.c.bf16 %v864_v62, %v863_v61  ;;  %v867_v4 = vld [vmem:[#allocation8 + $0x60] sm:$0xff]  ;;  %v868_v6 = vld [vmem:[#allocation8 + $0x68] sm:$0xff] }
 0x197   : > { %v1652_v14 = vpop.eup %1651  ;;  %v582_v15 = vadd.f32 1.0, %v1650_v3  ;;  %v555_v16 = vmul.f32 0.70710677, %v509_v11  ;;  %v1331_v17 = vpop.f32.mrb[14].mxu0  ;;  %1542 = vmatprep.subr.bf16.mxu1 %v2189_v8  ;;  %v539_v46 = vmul.f32 0.5, %v509_v11  ;;  %1521 = vmatprep.subr.bf16.mxu0 %v1520_v60  ;;  %v1528_v2 = vpack.c.bf16 %v866_v1, %v865_v0  ;;  %v870_v11 = vld [vmem:[#allocation8 + $0x78] sm:$0xff] }
 0x198   : > { %v581_v20 = vadd.f32 1.0, %v1652_v14  ;;  %1661 = verf.f32 %v556_v12  ;;  %v524_v21 = vadd.f32 %v1331_v17, %v2197_v9  ;;  %v518_v22 = vpop.f32.mrb[15].mxu0  ;;  %1370 = vmatprep.mubr.f32.mxu1 %v595_v13  ;;  %1523 = vmatpush3.bf16.msra.mxu0 %v1520_v60  ;;  %v1532_v7 = vpack.c.bf16 %v868_v6, %v867_v4  ;;  %v2239_v12 = vld [vmem:[%s2347_s4] ss:$0 sm:$0xff] }
 0x199   : > { %1663 = verf.f32 %v555_v16  ;;  %v519_v24 = vadd.f32 %v2197_v9, %v518_v22  ;;  %1371 = vmatmul.mubr.f32.gmra.mrb[4].mxu1 %v596_v18  ;;  %v598_v31 = vmul.f32 %v582_v15, %v534_v23  ;;  %1525 = vmatprep.subr.bf16.mxu0 %v1524_v63  ;;  %v1536_v3 = vpack.c.bf16 %v870_v11, %v869_v10 }
 0x19a   : > { %v1654_v5 = vpop.eup %1653  ;;  %v558_v25 = vmul.f32 0.70710677, %v524_v21  ;;  %v597_v26 = vmul.f32 %v581_v20, %v533_v19  ;;  %1550 = vmatpush3.bf16.msra.mxu1 %v2189_v8  ;;  %v542_v54 = vmul.f32 0.5, %v524_v21 }
 0x19b   : > { %v1656_v27 = vpop.eup %1655  ;;  %v584_v28 = vadd.f32 1.0, %v1654_v5  ;;  %v557_v30 = vmul.f32 0.70710677, %v519_v24  ;;  %v541_v53 = vmul.f32 0.5, %v519_v24  ;;  %1543 = vmatprep.subr.bf16.mxu1 %v1520_v60 }
 0x19c   : > { %v583_v33 = vadd.f32 1.0, %v1656_v27  ;;  %1665 = verf.f32 %v558_v25  ;;  %1373 = vmatprep.mubr.f32.mxu1 %v597_v26  ;;  %1527 = vmatpush3.bf16.msra.mxu0 %v1524_v63 }
 0x19d   : > { %1667 = verf.f32 %v557_v30  ;;  %1374 = vmatmul.mubr.f32.gmra.mrb[6].mxu1 %v598_v31  ;;  %v600_v37 = vmul.f32 %v584_v28, %v536_v29  ;;  %1529 = vmatprep.subr.bf16.mxu0 %v1528_v2 }
 0x19e   : > { %v1658_v9 = vpop.eup %1657  ;;  %v599_v34 = vmul.f32 %v583_v33, %v535_v32  ;;  %1551 = vmatpush3.bf16.msra.mxu1 %v1520_v60 }
 0x19f   : > { %v1660_v35 = vpop.eup %1659  ;;  %v586_v36 = vadd.f32 1.0, %v1658_v9  ;;  %1544 = vmatprep.subr.bf16.mxu1 %v1524_v63 }
 0x1a0   : > { %v585_v8 = vadd.f32 1.0, %v1660_v35  ;;  %1376 = vmatprep.mubr.f32.mxu1 %v599_v34  ;;  %1531 = vmatpush3.bf16.msra.mxu0 %v1528_v2 }
 0x1a1   : > { %1377 = vmatmul.mubr.f32.gmra.mrb[8].mxu1 %v600_v37  ;;  %v602_v45 = vmul.f32 %v586_v36, %v538_v40  ;;  %1533 = vmatprep.subr.bf16.mxu0 %v1532_v7 }
 0x1a2   : > { %v1662_v41 = vpop.eup %1661  ;;  %v601_v42 = vmul.f32 %v585_v8, %v537_v39  ;;  %1552 = vmatpush3.bf16.msra.mxu1 %v1524_v63 }
 0x1a3   : > { %v1664_v43 = vpop.eup %1663  ;;  %v588_v44 = vadd.f32 1.0, %v1662_v41  ;;  %1545 = vmatprep.subr.bf16.mxu1 %v1528_v2 }
 0x1a4   : > { %v587_v38 = vadd.f32 1.0, %v1664_v43  ;;  %1379 = vmatprep.mubr.f32.mxu1 %v601_v42  ;;  %1535 = vmatpush3.bf16.msra.mxu0 %v1532_v7 }
 0x1a5   : > { %1380 = vmatmul.mubr.f32.gmra.mrb[10].mxu1 %v602_v45  ;;  %v604_v52 = vmul.f32 %v588_v44, %v540_v47  ;;  %1537 = vmatprep.subr.bf16.mxu0 %v1536_v3 }
 0x1a6   : > { %v1666_v48 = vpop.eup %1665  ;;  %v603_v49 = vmul.f32 %v587_v38, %v539_v46  ;;  %1553 = vmatpush3.bf16.msra.mxu1 %v1528_v2 }
 0x1a7   : > { %v1668_v50 = vpop.eup %1667  ;;  %v590_v51 = vadd.f32 1.0, %v1666_v48  ;;  %1546 = vmatprep.subr.bf16.mxu1 %v1532_v7 }
 0x1a8   : > { %v589_v55 = vadd.f32 1.0, %v1668_v50  ;;  %1382 = vmatprep.mubr.f32.mxu1 %v603_v49  ;;  %1539 = vmatpush3.bf16.msra.mxu0 %v1536_v3 }
 0x1a9   : > { %1383 = vmatmul.mubr.f32.gmra.mrb[12].mxu1 %v604_v52  ;;  %v606_v57 = vmul.f32 %v590_v51, %v542_v54 }
 0x1aa   : > { %v605_v56 = vmul.f32 %v589_v55, %v541_v53  ;;  %1554 = vmatpush3.bf16.msra.mxu1 %v1532_v7 }
 0x1ab   : > { %1547 = vmatprep.subr.bf16.mxu1 %v1536_v3 }
 0x1ac   : > { %1385 = vmatprep.mubr.f32.mxu1 %v605_v56 }
 0x1ad   : > { %1386 = vmatmul.mubr.f32.gmra.mrb[14].mxu1 %v606_v57 }
 0x1ae   : > { %1555 = vmatpush3.bf16.msra.mxu1 %v1536_v3 }
 0x264   : > { %v1366_v13 = vpop.f32.mrb[0].mxu1 }
 0x265   : > { %v702_v14 = vadd.f32 %v1366_v13, %v2239_v12  ;;  %v696_v15 = vpop.f32.mrb[1].mxu1 }
 0x266   : > { %v697_v16 = vadd.f32 %v2239_v12, %v696_v15 }
 0x267   : > { %v792_v17 = vmul.f32 0.70710677, %v702_v14  ;;  %v776_v43 = vmul.f32 0.5, %v702_v14 }
 0x268   : > { %v791_v18 = vmul.f32 0.70710677, %v697_v16  ;;  %v1369_v19 = vpop.f32.mrb[2].mxu1  ;;  %v775_v8 = vmul.f32 0.5, %v697_v16 }
 0x269   : > { %1669 = verf.f32 %v792_v17  ;;  %v712_v20 = vadd.f32 %v1369_v19, %v2239_v12  ;;  %v706_v21 = vpop.f32.mrb[3].mxu1 }
 0x26a   : > { %1671 = verf.f32 %v791_v18  ;;  %v707_v22 = vadd.f32 %v2239_v12, %v706_v21 }
 0x26b   : > { %v794_v23 = vmul.f32 0.70710677, %v712_v20  ;;  %v778_v56 = vmul.f32 0.5, %v712_v20 }
 0x26c   : > { %v793_v24 = vmul.f32 0.70710677, %v707_v22  ;;  %v1372_v5 = vpop.f32.mrb[4].mxu1  ;;  %v777_v52 = vmul.f32 0.5, %v707_v22 }
 0x26d   : > { %1673 = verf.f32 %v794_v23  ;;  %v722_v25 = vadd.f32 %v1372_v5, %v2239_v12  ;;  %v716_v26 = vpop.f32.mrb[5].mxu1 }
 0x26e   : > { %1675 = verf.f32 %v793_v24  ;;  %v717_v27 = vadd.f32 %v2239_v12, %v716_v26 }
 0x26f   : > { %v796_v28 = vmul.f32 0.70710677, %v722_v25  ;;  %v780_v10 = vmul.f32 0.5, %v722_v25 }
 0x270   : > { %v795_v30 = vmul.f32 0.70710677, %v717_v27  ;;  %v1375_v31 = vpop.f32.mrb[6].mxu1  ;;  %v779_v2 = vmul.f32 0.5, %v717_v27 }
 0x271   : > { %1677 = verf.f32 %v796_v28  ;;  %v2248_v32 = vadd.f32 %v1375_v31, %v2239_v12  ;;  %v726_v33 = vpop.f32.mrb[7].mxu1 }
 0x272   : > { %1679 = verf.f32 %v795_v30  ;;  %v727_v29 = vadd.f32 %v2239_v12, %v726_v33 }
 0x273   : > { %v1670_v9 = vpop.eup %1669  ;;  %v798_v34 = vmul.f32 0.70710677, %v2248_v32  ;;  %v782_v24 = vmul.f32 0.5, %v2248_v32 }
 0x274   : > { %v1672_v35 = vpop.eup %1671  ;;  %v824_v36 = vadd.f32 1.0, %v1670_v9  ;;  %v797_v37 = vmul.f32 0.70710677, %v727_v29  ;;  %v1378_v39 = vpop.f32.mrb[8].mxu1  ;;  %v781_v20 = vmul.f32 0.5, %v727_v29 }
 0x275   : > { %v823_v40 = vadd.f32 1.0, %v1672_v35  ;;  %1681 = verf.f32 %v798_v34  ;;  %v2253_v41 = vadd.f32 %v1378_v39, %v2239_v12  ;;  %v736_v42 = vpop.f32.mrb[9].mxu1 }
 0x276   : > { %1683 = verf.f32 %v797_v37  ;;  %v737_v44 = vadd.f32 %v2239_v12, %v736_v42  ;;  %v840_v48 = vmul.f32 %v824_v36, %v776_v43 }
 0x277   : > { %v1674_v45 = vpop.eup %1673  ;;  %v800_v46 = vmul.f32 0.70710677, %v2253_v41  ;;  %v839_v38 = vmul.f32 %v823_v40, %v775_v8  ;;  %v784_v34 = vmul.f32 0.5, %v2253_v41 }
 0x278   : > { %v1676_v47 = vpop.eup %1675  ;;  %v826_v49 = vadd.f32 1.0, %v1674_v45  ;;  %v799_v50 = vmul.f32 0.70710677, %v737_v44  ;;  %v1381_v51 = vpop.f32.mrb[10].mxu1  ;;  %v783_v29 = vmul.f32 0.5, %v737_v44 }
 0x279   : > { %v825_v53 = vadd.f32 1.0, %v1676_v47  ;;  %1685 = verf.f32 %v800_v46  ;;  %v2258_v55 = vadd.f32 %v1381_v51, %v2239_v12  ;;  %v746_v54 = vpop.f32.mrb[11].mxu1  ;;  %1420 = vmatprep.mubr.f32.mxu0 %v839_v38 }
 0x27a   : > { %1687 = verf.f32 %v799_v50  ;;  %v747_v57 = vadd.f32 %v2239_v12, %v746_v54  ;;  %1421 = vmatmul.mubr.f32.vlgmr.msra.gmra.mrb[16].mxu0 %v840_v48  ;;  %v842_v1 = vmul.f32 %v826_v49, %v778_v56 }
 0x27b   : > { %v1678_v58 = vpop.eup %1677  ;;  %v802_v59 = vmul.f32 0.70710677, %v2258_v55  ;;  %v841_v60 = vmul.f32 %v825_v53, %v777_v52  ;;  %v786_v40 = vmul.f32 0.5, %v2258_v55 }
 0x27c   : > { %v1680_v61 = vpop.eup %1679  ;;  %v828_v62 = vadd.f32 1.0, %v1678_v58  ;;  %v801_v63 = vmul.f32 0.70710677, %v747_v57  ;;  %v1384_v0 = vpop.f32.mrb[12].mxu1  ;;  %v785_v39 = vmul.f32 0.5, %v747_v57 }
 0x27d   : > { %v827_v4 = vadd.f32 1.0, %v1680_v61  ;;  %1689 = verf.f32 %v802_v59  ;;  %v762_v6 = vadd.f32 %v1384_v0, %v2239_v12  ;;  %v756_v7 = vpop.f32.mrb[13].mxu1  ;;  %1423 = vmatprep.mubr.f32.mxu0 %v841_v60  ;;  %v1172_v58 = vld [vmem:[%s2349_s6] ss:$0 sm:$0xff] }
 0x27e   : > { %1691 = verf.f32 %v801_v63  ;;  %v757_v11 = vadd.f32 %v2239_v12, %v756_v7  ;;  %1424 = vmatmul.mubr.f32.gmra.mrb[18].mxu0 %v842_v1  ;;  %v844_v19 = vmul.f32 %v828_v62, %v780_v10 }
 0x27f   : > { %v1682_v3 = vpop.eup %1681  ;;  %v804_v13 = vmul.f32 0.70710677, %v762_v6  ;;  %v843_v14 = vmul.f32 %v827_v4, %v779_v2  ;;  %v788_v47 = vmul.f32 0.5, %v762_v6 }
 0x280   : > { %v1684_v15 = vpop.eup %1683  ;;  %v830_v16 = vadd.f32 1.0, %v1682_v3  ;;  %v803_v17 = vmul.f32 0.70710677, %v757_v11  ;;  %v1387_v18 = vpop.f32.mrb[14].mxu1  ;;  %v787_v38 = vmul.f32 0.5, %v757_v11 }
 0x281   : > { %v829_v21 = vadd.f32 1.0, %v1684_v15  ;;  %1693 = verf.f32 %v804_v13  ;;  %v772_v22 = vadd.f32 %v1387_v18, %v2239_v12  ;;  %v766_v23 = vpop.f32.mrb[15].mxu1  ;;  %1426 = vmatprep.mubr.f32.mxu0 %v843_v14 }
 0x282   : > { %1695 = verf.f32 %v803_v17  ;;  %v767_v5 = vadd.f32 %v2239_v12, %v766_v23  ;;  %1427 = vmatmul.mubr.f32.gmra.mrb[20].mxu0 %v844_v19  ;;  %v846_v33 = vmul.f32 %v830_v16, %v782_v24 }
 0x283   : > { %v1686_v25 = vpop.eup %1685  ;;  %v806_v26 = vmul.f32 0.70710677, %v772_v22  ;;  %v845_v27 = vmul.f32 %v829_v21, %v781_v20  ;;  %v790_v55 = vmul.f32 0.5, %v772_v22 }
 0x284   : > { %v1688_v28 = vpop.eup %1687  ;;  %v832_v30 = vadd.f32 1.0, %v1686_v25  ;;  %v805_v31 = vmul.f32 0.70710677, %v767_v5  ;;  %v789_v53 = vmul.f32 0.5, %v767_v5 }
 0x285   : > { %v831_v9 = vadd.f32 1.0, %v1688_v28  ;;  %1697 = verf.f32 %v806_v26  ;;  %1429 = vmatprep.mubr.f32.mxu0 %v845_v27 }
 0x286   : > { %1699 = verf.f32 %v805_v31  ;;  %1430 = vmatmul.mubr.f32.gmra.mrb[22].mxu0 %v846_v33  ;;  %v848_v12 = vmul.f32 %v832_v30, %v784_v34 }
 0x287   : > { %v1690_v32 = vpop.eup %1689  ;;  %v847_v35 = vmul.f32 %v831_v9, %v783_v29 }
 0x288   : > { %v1692_v36 = vpop.eup %1691  ;;  %v834_v37 = vadd.f32 1.0, %v1690_v32 }
 0x289   : > { %v833_v8 = vadd.f32 1.0, %v1692_v36  ;;  %1432 = vmatprep.mubr.f32.mxu1 %v847_v35 }
 0x28a   : > { %1433 = vmatmul.mubr.f32.vlgmr.msra.gmra.mrb[16].mxu1 %v848_v12  ;;  %v850_v46 = vmul.f32 %v834_v37, %v786_v40 }
 0x28b   : > { %v1694_v42 = vpop.eup %1693  ;;  %v849_v43 = vmul.f32 %v833_v8, %v785_v39 }
 0x28c   : > { %v1696_v44 = vpop.eup %1695  ;;  %v836_v45 = vadd.f32 1.0, %v1694_v42 }
 0x28d   : > { %v835_v41 = vadd.f32 1.0, %v1696_v44  ;;  %1435 = vmatprep.mubr.f32.mxu1 %v849_v43 }
 0x28e   : > { %1436 = vmatmul.mubr.f32.gmra.mrb[18].mxu1 %v850_v46  ;;  %v852_v52 = vmul.f32 %v836_v45, %v788_v47 }
 0x28f   : > { %v1698_v48 = vpop.eup %1697  ;;  %v851_v49 = vmul.f32 %v835_v41, %v787_v38 }
 0x290   : > { %v1700_v50 = vpop.eup %1699  ;;  %v838_v51 = vadd.f32 1.0, %v1698_v48 }
 0x291   : > { %v837_v54 = vadd.f32 1.0, %v1700_v50  ;;  %1438 = vmatprep.mubr.f32.mxu1 %v851_v49 }
 0x292   : > { %1439 = vmatmul.mubr.f32.gmra.mrb[20].mxu1 %v852_v52  ;;  %v854_v57 = vmul.f32 %v838_v51, %v790_v55 }
 0x293   : > { %v853_v56 = vmul.f32 %v837_v54, %v789_v53 }
 0x295   : > { %1441 = vmatprep.mubr.f32.mxu1 %v853_v56 }
 0x296   : > { %1442 = vmatmul.mubr.f32.gmra.mrb[22].mxu1 %v854_v57 }
 0x34d   : > { %v1422_v59 = vpop.f32.mrb[16].mxu0 }
 0x34e   : > { %v950_v60 = vadd.f32 %v1422_v59, %v1172_v58  ;;  %v944_v61 = vpop.f32.mrb[17].mxu0 }
 0x34f   : > { %v945_v62 = vadd.f32 %v1172_v58, %v944_v61 }
 0x350   : > { %1024 = vst [vmem:[%s2274_s12 + $0x8] sm:$0xff] %v950_v60 }
 0x351   : > { %1023 = vst [vmem:[%s2274_s12] sm:$0xff] %v945_v62  ;;  %v1425_v63 = vpop.f32.mrb[18].mxu0 }
 0x352   : > { %v960_v0 = vadd.f32 %v1425_v63, %v1172_v58  ;;  %v954_v1 = vpop.f32.mrb[19].mxu0 }
 0x353   : > { %v955_v2 = vadd.f32 %v1172_v58, %v954_v1 }
 0x354   : > { %1026 = vst [vmem:[%s2274_s12 + $0x18] sm:$0xff] %v960_v0 }
 0x355   : > { %1025 = vst [vmem:[%s2274_s12 + $0x10] sm:$0xff] %v955_v2  ;;  %v1428_v4 = vpop.f32.mrb[20].mxu0 }
 0x356   : > { %v970_v6 = vadd.f32 %v1428_v4, %v1172_v58  ;;  %v964_v7 = vpop.f32.mrb[21].mxu0 }
 0x357   : > { %v965_v10 = vadd.f32 %v1172_v58, %v964_v7 }
 0x358   : > { %1028 = vst [vmem:[%s2274_s12 + $0x28] sm:$0xff] %v970_v6 }
 0x359   : > { %1027 = vst [vmem:[%s2274_s12 + $0x20] sm:$0xff] %v965_v10  ;;  %v1431_v11 = vpop.f32.mrb[22].mxu0 }
 0x35a   : > { %v980_v3 = vadd.f32 %v1431_v11, %v1172_v58  ;;  %v974_v13 = vpop.f32.mrb[23].mxu0 }
 0x35b   : > { %v975_v14 = vadd.f32 %v1172_v58, %v974_v13 }
 0x35c   : > { %1030 = vst [vmem:[%s2274_s12 + $0x38] sm:$0xff] %v980_v3 }
 0x35d   : > { %1029 = vst [vmem:[%s2274_s12 + $0x30] sm:$0xff] %v975_v14  ;;  %v1434_v15 = vpop.f32.mrb[16].mxu1 }
 0x35e   : > { %v990_v16 = vadd.f32 %v1434_v15, %v1172_v58  ;;  %v984_v17 = vpop.f32.mrb[17].mxu1 }
 0x35f   : > { %v985_v18 = vadd.f32 %v1172_v58, %v984_v17 }
 0x360   : > { %1032 = vst [vmem:[%s2274_s12 + $0x48] sm:$0xff] %v990_v16 }
 0x361   : > { %1031 = vst [vmem:[%s2274_s12 + $0x40] sm:$0xff] %v985_v18  ;;  %v1437_v19 = vpop.f32.mrb[18].mxu1 }
 0x362   : > { %v1000_v20 = vadd.f32 %v1437_v19, %v1172_v58  ;;  %v994_v21 = vpop.f32.mrb[19].mxu1 }
 0x363   : > { %v995_v22 = vadd.f32 %v1172_v58, %v994_v21 }
 0x364   : > { %1034 = vst [vmem:[%s2274_s12 + $0x58] sm:$0xff] %v1000_v20 }
 0x365   : > { %1033 = vst [vmem:[%s2274_s12 + $0x50] sm:$0xff] %v995_v22  ;;  %v1440_v23 = vpop.f32.mrb[20].mxu1 }
 0x366   : > { %v1010_v24 = vadd.f32 %v1440_v23, %v1172_v58  ;;  %v1004_v5 = vpop.f32.mrb[21].mxu1 }
 0x367   : > { %v1005_v25 = vadd.f32 %v1172_v58, %v1004_v5 }
 0x368   : > { %1036 = vst [vmem:[%s2274_s12 + $0x68] sm:$0xff] %v1010_v24 }
 0x369   : > { %1035 = vst [vmem:[%s2274_s12 + $0x60] sm:$0xff] %v1005_v25  ;;  %v1443_v26 = vpop.f32.mrb[22].mxu1 }
 0x36a   : > { %v1020_v27 = vadd.f32 %v1443_v26, %v1172_v58  ;;  %v1014_v28 = vpop.f32.mrb[23].mxu1 }
 0x36b   : > { %v1015_v30 = vadd.f32 %v1172_v58, %v1014_v28 }
 0x36c   : > { %1038 = vst [vmem:[%s2274_s12 + $0x78] sm:$0xff] %v1020_v27 }
 0x36d   : > { %1037 = vst [vmem:[%s2274_s12 + $0x70] sm:$0xff] %v1015_v30 }
 0x36e   : > { %1828 = shalt.err (!%p1825_p4)
}
 0x36f   : > { %s1829_s13 = scalar_lea.hbm %s2295_s23, 2048  ;;  %s1833_s14 = scalar_lea.hbm %s2350_s7, 4096 }
 0x370   : > { %p1830_p9 = scmp.ne.s32.totalorder %s2295_s23, %s1829_s13  ;;  %p1834_p8 = scmp.lt.u32.totalorder %s2295_s23, %s2350_s7 }
 0x371   : > { %p1835_p13 = scmp.lt.u32.totalorder %s1833_s14, %s1829_s13  ;;  %p1837_p10 = scmp.lt.u32.totalorder %s1829_s13, %s2295_s23 }
 0x372   : > { %p1831_p0 = pnand %p1830_p9, %p2094_p5 }
 0x373   : > { %p1836_p6 = por %p1835_p13, %p1834_p8 }
 0x374   : > { %p1832_p11 = pneg %p1831_p0 }
 0x375   : > { %p1838_p3 = por %p1837_p10, %p1836_p6 }
 0x377   : > { %p1839_p7 = pnand %p1838_p3, %p1832_p11 }
 0x379   : > { %1842 = shalt.err (!%p1839_p7)
}
 0x37a   : > { %s1898_s16 = smov 128   ;;  %s1899_s29 = smov 8  }
 0x37b   : > { %1570 = dma.vmem_to_hbm [thread:$0]  (%p2094_p5), %s2297_s21, 2048, %s2295_s23, %s1040_s28, %s1898_s16, %s1898_s16, %s1899_s29  }
 0x37c PF: > { %s2370_s11 = sld [smem:[#allocation15_spill]]  ;;  %s1068_s8 = sand.u32 1, %s1877_s24  }
 0x37d   : > { %p2372_p1 = scmp.ge.s32.totalorder %s1889_s27, 2  ;;  %s1069_s30 = scalar_lea.sflag [#allocation4], %s1068_s8 }
 0x382   : > { %p2371_p12 = scmp.ne.s32.totalorder %s2370_s11, 0 }
 0x384   : > { %p1587_p2 = pnand %p2372_p1, %p2371_p12 }
 0x386   : > { %1872 = dma.done.wait (!%p1587_p2), %s1069_s30, 2048  }
 0x387   : > { %1874 = vsyncadd (!%p1587_p2), %s1069_s30, 4294965248  ;;  %p22_p4 = scmp.ge.s32.totalorder %s2080_s22, 4   ;;  %s2373_s24 = smov %s1881_s25 }
 0x388   : > { %s2374_s25 = smov %s1885_s26  ;;  %s2375_s26 = smov %s2090_s18 }
 0x389   : > { %s2376_s27 = smov %s2080_s22  ;;  %24 = sbr.rel (!%p22_p4) target bundleno = 7 (0x7), region = 105 }
 0x390   :  { %1074 = vsyncpa [#allocation3], 1 }
 0x391   :  { %1076 = vsyncpa [#allocation3 + $0x1], 1 }
 0x392   :  { %1077 = vsyncpa [#allocation6], 1 }
 0x393   :  { %1078 = vsyncpa [#allocation9], 1 }
 0x394   :  { %1079 = vsyncpa [#allocation4], 1 }
 0x395   :  { %1081 = vsyncpa [#allocation4 + $0x1], 1 }

</bundles_post_ra>
